<compile_context>
chip_gen: v6e
topology: v6e:2x2x1
jax: 0.10.0
libtpu: 0.0.40
codegen_flags: <defaults>
</compile_context>

<pallas_src>
import jax
import jax.numpy as jnp
import numpy as np
from jax.experimental import pallas as pl
from jax.experimental.pallas import tpu as pltpu

NN_LAYER_1 = 100
NN_LAYER_2 = 100
HIDDEN_PAD = 128          # lane-dense padded hidden width


def _double_qnet_kernel(s_ref, a_ref,
                        w1s_ref, w1a_ref, b1_ref,
                        w2_ref, b2_ref,
                        wo_ref, bo_ref,
                        q_ref):
    # Layer 1: concat(state, action) @ W1 computed as two matmuls on the
    # split weight (no concat buffer ever hits HBM or VMEM).
    h1 = (jnp.dot(s_ref[...], w1s_ref[...], preferred_element_type=jnp.float32)
          + jnp.dot(a_ref[...], w1a_ref[...], preferred_element_type=jnp.float32)
          + b1_ref[...])
    h1 = jnp.maximum(h1, 0.0)

    # Layer 2: lane-dense [TB,128] x [128,128] MXU tile.
    h2 = jnp.dot(h1, w2_ref[...], preferred_element_type=jnp.float32) + b2_ref[...]
    h2 = jnp.maximum(h2, 0.0)

    # Output head (width 1): broadcast multiply + lane reduce (VPU + XLU)
    # instead of a lane-sparse N=1 MXU matmul.
    q_ref[...] = jnp.sum(h2 * wo_ref[...], axis=-1, keepdims=True) + bo_ref[...]


def _round_up(x, m):
    return (x + m - 1) // m * m


def double_qnet_forward(state, action, kparams, *, block_b=512):
    """state: [B, state_dim] f32; action: [B, act_dim] f32;
    kparams: padded/split kernel params from pad_params_for_kernel."""
    B, S = state.shape
    A = action.shape[1]
    H = HIDDEN_PAD

    # Batch tile: multiple of 8 sublanes; large tiles for big batches.
    TB = block_b if B >= block_b else _round_up(B, 8)
    B_pad = _round_up(B, TB)
    if B_pad != B:
        pad = ((0, B_pad - B), (0, 0))
        state = jnp.pad(state, pad)
        action = jnp.pad(action, pad)

    grid = (B_pad // TB,)

    q = pl.pallas_call(
        _double_qnet_kernel,
        out_shape=jax.ShapeDtypeStruct((B_pad, 1), jnp.float32),
        grid=grid,
        in_specs=[
            pl.BlockSpec((TB, S), lambda i: (i, 0)),   # state  (streamed)
            pl.BlockSpec((TB, A), lambda i: (i, 0)),   # action (streamed)
            pl.BlockSpec((S, H), lambda i: (0, 0)),    # W1 state rows (resident)
            pl.BlockSpec((A, H), lambda i: (0, 0)),    # W1 action rows
            pl.BlockSpec((1, H), lambda i: (0, 0)),    # b1
            pl.BlockSpec((H, H), lambda i: (0, 0)),    # W2
            pl.BlockSpec((1, H), lambda i: (0, 0)),    # b2
            pl.BlockSpec((1, H), lambda i: (0, 0)),    # W_out (as a row)
            pl.BlockSpec((1, 1), lambda i: (0, 0)),    # b_out
        ],
        out_specs=pl.BlockSpec((TB, 1), lambda i: (i, 0)),
        compiler_params=pltpu.CompilerParams(
            dimension_semantics=("parallel",)),
    )(state, action,
      kparams["w1s"], kparams["w1a"], kparams["b1"],
      kparams["w2"], kparams["b2"],
      kparams["wo_row"], kparams["bo"])
    return q[:B]


def init_params(key, state_dim, act_dim):
    """Unpadded parameters in PyTorch nn.Linear convention, stored
    pre-transposed as [in_features, out_features]."""
    def linear(k, n_in, n_out):
        k1, k2 = jax.random.split(k)
        bound = 1.0 / np.sqrt(n_in)
        w = jax.random.uniform(k1, (n_in, n_out), jnp.float32, -bound, bound)
        b = jax.random.uniform(k2, (n_out,), jnp.float32, -bound, bound)
        return w, b

    k1, k2, k3 = jax.random.split(key, 3)
    w1, b1 = linear(k1, state_dim + act_dim, NN_LAYER_1)
    w2, b2 = linear(k2, NN_LAYER_1, NN_LAYER_2)
    wo, bo = linear(k3, NN_LAYER_2, 1)
    return dict(w1=w1, b1=b1, w2=w2, b2=b2, wo=wo, bo=bo)


def pad_params_for_kernel(params, state_dim, act_dim):
    """Zero-pad hidden dims 100 -> 128 and split W1 into state/action rows.
    Padded lanes carry zero weights and zero biases, so relu keeps them at
    exactly 0 and downstream matmuls are numerically unchanged."""
    H = HIDDEN_PAD
    w1, b1 = params["w1"], params["b1"]
    w2, b2 = params["w2"], params["b2"]
    wo, bo = params["wo"], params["bo"]

    w1p = jnp.zeros((state_dim + act_dim, H), jnp.float32).at[:, :NN_LAYER_1].set(w1)
    b1p = jnp.zeros((1, H), jnp.float32).at[:, :NN_LAYER_1].set(b1[None, :])
    w2p = jnp.zeros((H, H), jnp.float32).at[:NN_LAYER_1, :NN_LAYER_2].set(w2)
    b2p = jnp.zeros((1, H), jnp.float32).at[:, :NN_LAYER_2].set(b2[None, :])
    wop = jnp.zeros((1, H), jnp.float32).at[:, :NN_LAYER_2].set(wo[:, 0][None, :])
    bop = jnp.reshape(bo, (1, 1)).astype(jnp.float32)

    return dict(
        w1s=w1p[:state_dim],
        w1a=w1p[state_dim:],
        b1=b1p, w2=w2p, b2=b2p,
        wo_row=wop, bo=bop,
    )


def _reference_forward(state, action, params):
    """Pure-JAX reference matching the PyTorch DoubleQNet forward."""
    x = jnp.concatenate([state, action], axis=1)
    h1 = jnp.maximum(x @ params["w1"] + params["b1"], 0.0)
    h2 = jnp.maximum(h1 @ params["w2"] + params["b2"], 0.0)
    return h2 @ params["wo"] + params["bo"]


if __name__ == "__main__":
    key = jax.random.PRNGKey(0)
    k_params, k_state, k_action = jax.random.split(key, 3)

    batch = 8
    state_dim = 16
    act_dim = 4

    params = init_params(k_params, state_dim, act_dim)
    kparams = pad_params_for_kernel(params, state_dim, act_dim)

    state = jax.random.normal(k_state, (batch, state_dim), jnp.float32)
    action = jax.random.normal(k_action, (batch, act_dim), jnp.float32)

    q = double_qnet_forward(state, action, kparams)
    jax.block_until_ready(q)

    q_ref = _reference_forward(state, action, params)
    np.testing.assert_allclose(np.asarray(q), np.asarray(q_ref),
                               rtol=1e-5, atol=1e-5)

    print("KERNEL_OK")
</pallas_src>

<mosaic_0001>
module attributes {stable_mosaic.version = 11 : i64} {
  func.func @_double_qnet_kernel(%arg0: i32, %arg1: memref<8x16xf32, #tpu.memory_space<vmem>>, %arg2: memref<8x4xf32, #tpu.memory_space<vmem>>, %arg3: memref<16x128xf32, #tpu.memory_space<vmem>>, %arg4: memref<4x128xf32, #tpu.memory_space<vmem>>, %arg5: memref<1x128xf32, #tpu.memory_space<vmem>>, %arg6: memref<128x128xf32, #tpu.memory_space<vmem>>, %arg7: memref<1x128xf32, #tpu.memory_space<vmem>>, %arg8: memref<1x128xf32, #tpu.memory_space<vmem>>, %arg9: memref<1x1xf32, #tpu.memory_space<vmem>>, %arg10: memref<8x1xf32, #tpu.memory_space<vmem>>) attributes {dimension_semantics = [#tpu.dimension_semantics<parallel>], iteration_bounds = array<i64: 1>, scalar_prefetch = 0 : i64, scratch_operands = 0 : i64, tpu.core_type = #tpu.core_type<tc>, window_params = [{transform_indices = @transform_0, window_bounds = array<i64: 8, 16>}, {transform_indices = @transform_1, window_bounds = array<i64: 8, 4>}, {pipeline_mode = #tpu.pipeline_mode<synchronous>, transform_indices = @transform_2, window_bounds = array<i64: 16, 128>}, {pipeline_mode = #tpu.pipeline_mode<synchronous>, transform_indices = @transform_3, window_bounds = array<i64: 4, 128>}, {pipeline_mode = #tpu.pipeline_mode<synchronous>, transform_indices = @transform_4, window_bounds = array<i64: 1, 128>}, {pipeline_mode = #tpu.pipeline_mode<synchronous>, transform_indices = @transform_5, window_bounds = array<i64: 128, 128>}, {pipeline_mode = #tpu.pipeline_mode<synchronous>, transform_indices = @transform_6, window_bounds = array<i64: 1, 128>}, {pipeline_mode = #tpu.pipeline_mode<synchronous>, transform_indices = @transform_7, window_bounds = array<i64: 1, 128>}, {pipeline_mode = #tpu.pipeline_mode<synchronous>, transform_indices = @transform_8, window_bounds = array<i64: 1, 1>}, {transform_indices = @transform_9, window_bounds = array<i64: 8, 1>}]} {
    %c0 = arith.constant 0 : index
    %c0_0 = arith.constant 0 : index
    %0 = vector.load %arg1[%c0, %c0_0] : memref<8x16xf32, #tpu.memory_space<vmem>>, vector<8x16xf32>
    %c0_1 = arith.constant 0 : index
    %c0_2 = arith.constant 0 : index
    %1 = vector.load %arg3[%c0_1, %c0_2] : memref<16x128xf32, #tpu.memory_space<vmem>>, vector<16x128xf32>
    %cst = arith.constant dense<0.000000e+00> : vector<8x128xf32>
    %2 = tpu.matmul %0, %1, %cst {dimension_numbers = #tpu.dot_dimension_numbers<[1], [0], [0], [1], [0, 0, 1, 1], [], []>} : vector<8x16xf32>, vector<16x128xf32>, vector<8x128xf32> -> vector<8x128xf32>
    %c0_3 = arith.constant 0 : index
    %c0_4 = arith.constant 0 : index
    %3 = vector.load %arg2[%c0_3, %c0_4] : memref<8x4xf32, #tpu.memory_space<vmem>>, vector<8x4xf32>
    %c0_5 = arith.constant 0 : index
    %c0_6 = arith.constant 0 : index
    %4 = vector.load %arg4[%c0_5, %c0_6] : memref<4x128xf32, #tpu.memory_space<vmem>>, vector<4x128xf32>
    %cst_7 = arith.constant dense<0.000000e+00> : vector<8x128xf32>
    %5 = tpu.matmul %3, %4, %cst_7 {dimension_numbers = #tpu.dot_dimension_numbers<[1], [0], [0], [1], [0, 0, 1, 1], [], []>} : vector<8x4xf32>, vector<4x128xf32>, vector<8x128xf32> -> vector<8x128xf32>
    %6 = arith.addf %2, %5 : vector<8x128xf32>
    %c0_8 = arith.constant 0 : index
    %c0_9 = arith.constant 0 : index
    %7 = vector.load %arg5[%c0_8, %c0_9] : memref<1x128xf32, #tpu.memory_space<vmem>>, vector<1x128xf32>
    %8 = vector.broadcast %7 : vector<1x128xf32> to vector<8x128xf32>
    %9 = arith.addf %6, %8 : vector<8x128xf32>
    %cst_10 = arith.constant 0.000000e+00 : f32
    %10 = vector.broadcast %cst_10 : f32 to vector<8x128xf32>
    %11 = arith.maximumf %9, %10 : vector<8x128xf32>
    %c0_11 = arith.constant 0 : index
    %c0_12 = arith.constant 0 : index
    %12 = vector.load %arg6[%c0_11, %c0_12] : memref<128x128xf32, #tpu.memory_space<vmem>>, vector<128x128xf32>
    %cst_13 = arith.constant dense<0.000000e+00> : vector<8x128xf32>
    %13 = tpu.matmul %11, %12, %cst_13 {dimension_numbers = #tpu.dot_dimension_numbers<[1], [0], [0], [1], [0, 0, 1, 1], [], []>} : vector<8x128xf32>, vector<128x128xf32>, vector<8x128xf32> -> vector<8x128xf32>
    %c0_14 = arith.constant 0 : index
    %c0_15 = arith.constant 0 : index
    %14 = vector.load %arg7[%c0_14, %c0_15] : memref<1x128xf32, #tpu.memory_space<vmem>>, vector<1x128xf32>
    %15 = vector.broadcast %14 : vector<1x128xf32> to vector<8x128xf32>
    %16 = arith.addf %13, %15 : vector<8x128xf32>
    %cst_16 = arith.constant 0.000000e+00 : f32
    %17 = vector.broadcast %cst_16 : f32 to vector<8x128xf32>
    %18 = arith.maximumf %16, %17 : vector<8x128xf32>
    %c0_17 = arith.constant 0 : index
    %c0_18 = arith.constant 0 : index
    %19 = vector.load %arg8[%c0_17, %c0_18] : memref<1x128xf32, #tpu.memory_space<vmem>>, vector<1x128xf32>
    %20 = vector.broadcast %19 : vector<1x128xf32> to vector<8x128xf32>
    %21 = arith.mulf %18, %20 : vector<8x128xf32>
    %cst_19 = arith.constant dense<0.000000e+00> : vector<8xf32>
    %22 = vector.multi_reduction <add>, %21, %cst_19 [1] : vector<8x128xf32> to vector<8xf32>
    %23 = vector.shape_cast %22 : vector<8xf32> to vector<8x1xf32>
    %c0_20 = arith.constant 0 : index
    %c0_21 = arith.constant 0 : index
    %24 = vector.load %arg9[%c0_20, %c0_21] : memref<1x1xf32, #tpu.memory_space<vmem>>, vector<1x1xf32>
    %25 = vector.broadcast %24 : vector<1x1xf32> to vector<8x1xf32>
    %26 = arith.addf %23, %25 : vector<8x1xf32>
    %c0_22 = arith.constant 0 : index
    %c0_23 = arith.constant 0 : index
    %27 = vector.load %arg10[%c0_22, %c0_23] : memref<8x1xf32, #tpu.memory_space<vmem>>, vector<8x1xf32>
    tpu.vector_store %arg10[%c0_22, %c0_23], %26 {strides = array<i32>} : memref<8x1xf32, #tpu.memory_space<vmem>>, vector<8x1xf32>,
    return
  }
  func.func @transform_0(%arg0: i32) -> (i32, i32) {
    %c0_i32 = arith.constant 0 : i32
    %c0_i32_0 = arith.constant 0 : i32
    return %arg0, %c0_i32 : i32, i32
  }
  func.func @transform_1(%arg0: i32) -> (i32, i32) {
    %c0_i32 = arith.constant 0 : i32
    %c0_i32_0 = arith.constant 0 : i32
    return %arg0, %c0_i32 : i32, i32
  }
  func.func @transform_2(%arg0: i32) -> (i32, i32) {
    %c0_i32 = arith.constant 0 : i32
    %c0_i32_0 = arith.constant 0 : i32
    %c0_i32_1 = arith.constant 0 : i32
    return %c0_i32, %c0_i32_0 : i32, i32
  }
  func.func @transform_3(%arg0: i32) -> (i32, i32) {
    %c0_i32 = arith.constant 0 : i32
    %c0_i32_0 = arith.constant 0 : i32
    %c0_i32_1 = arith.constant 0 : i32
    return %c0_i32, %c0_i32_0 : i32, i32
  }
  func.func @transform_4(%arg0: i32) -> (i32, i32) {
    %c0_i32 = arith.constant 0 : i32
    %c0_i32_0 = arith.constant 0 : i32
    %c0_i32_1 = arith.constant 0 : i32
    return %c0_i32, %c0_i32_0 : i32, i32
  }
  func.func @transform_5(%arg0: i32) -> (i32, i32) {
    %c0_i32 = arith.constant 0 : i32
    %c0_i32_0 = arith.constant 0 : i32
    %c0_i32_1 = arith.constant 0 : i32
    return %c0_i32, %c0_i32_0 : i32, i32
  }
  func.func @transform_6(%arg0: i32) -> (i32, i32) {
    %c0_i32 = arith.constant 0 : i32
    %c0_i32_0 = arith.constant 0 : i32
    %c0_i32_1 = arith.constant 0 : i32
    return %c0_i32, %c0_i32_0 : i32, i32
  }
  func.func @transform_7(%arg0: i32) -> (i32, i32) {
    %c0_i32 = arith.constant 0 : i32
    %c0_i32_0 = arith.constant 0 : i32
    %c0_i32_1 = arith.constant 0 : i32
    return %c0_i32, %c0_i32_0 : i32, i32
  }
  func.func @transform_8(%arg0: i32) -> (i32, i32) {
    %c0_i32 = arith.constant 0 : i32
    %c0_i32_0 = arith.constant 0 : i32
    %c0_i32_1 = arith.constant 0 : i32
    return %c0_i32, %c0_i32_0 : i32, i32
  }
  func.func @transform_9(%arg0: i32) -> (i32, i32) {
    %c0_i32 = arith.constant 0 : i32
    %c0_i32_0 = arith.constant 0 : i32
    return %arg0, %c0_i32 : i32, i32
  }
}

</mosaic_0001>

<bundles_post_ra>
// kernel: tpu_custom_call.1
= control target key start
LH: loop header
LB: loop body
LE: loop exit
PB: predicated region body
PF: predicated region fallthrough
CT: control target
= control target key end

     0   :  { %s616_s0 = inlined_call_operand.hbm [shape: f32[8,16], index: 0, kind: input, shape index: {}]   ;;  %s617_s1 = inlined_call_operand.vmem [shape: f32[8,4], index: 1, kind: input, shape index: {}]   ;;  %s618_s2 = inlined_call_operand.vmem [shape: f32[16,128], index: 2, kind: input, shape index: {}]   ;;  %s619_s3 = inlined_call_operand.hbm [shape: f32[4,128], index: 3, kind: input, shape index: {}]   ;;  %s620_s4 = inlined_call_operand.vmem [shape: f32[1,128], index: 4, kind: input, shape index: {}]   ;;  %s621_s5 = inlined_call_operand.hbm [shape: f32[128,128], index: 5, kind: input, shape index: {}]   ;;  %s622_s6 = inlined_call_operand.vmem [shape: f32[1,128], index: 6, kind: input, shape index: {}]   ;;  %s623_s7 = inlined_call_operand.vmem [shape: f32[1,128], index: 7, kind: input, shape index: {}]   ;;  %s624_s8 = inlined_call_operand.<no memory space> [shape: f32[1,1], index: 8, kind: input, shape index: {}]   ;;  %s625_s9 = inlined_call_operand.vmem [shape: f32[8,1], index: 9, kind: output, shape index: {}]  }
   0x1   :  { %v14_v0 = vstv %s624_s8 }
   0x2   :  { %15 = vst [vmem:[#allocation2] sm:$0x1] %v14_v0 }
   0x3   :  { %16 = vsyncpa [#allocation4], 0 }
   0x4   :  { %17 = vsyncpa [#allocation6], 0  ;;  %s504_s11 = smov [#allocation5]   ;;  %s505_s13 = smov [#allocation3]  }
   0x5   :  { %s38_s12 = sshll.u32 %s504_s11, 4  ;;  %s24_s14 = sshll.u32 %s505_s13, 4  ;;  %s39_s12 = int_to_ptr.vmem [resolvable:$true] %s38_s12  ;;  %s25_s14 = int_to_ptr.vmem [resolvable:$true] %s24_s14 }
   0x6   :  { %s448_s15 = scalar_lea.vmem %s39_s12, 64  ;;  %p453_p1 = scmp.lt.s32.totalorder %s39_s12, %s39_s12 }
   0x7   :  { %p449_p0 = scmp.ne.s32.totalorder %s39_s12, %s448_s15  ;;  %p454_p2 = scmp.lt.s32.totalorder %s448_s15, %s448_s15 }
   0x9   :  { %p455_p3 = por %p454_p2, %p453_p1 }
   0xb   :  { %p456_p4 = pnand %p455_p3, %p449_p0 }
   0xd   :  { %459 = shalt.err (!%p456_p4)
}
   0xe   :  { %41 = dma.hbm_to_vmem [thread:$0]  %s619_s3, 64, %s39_s12, [#allocation6]  }
   0xf   :  { %s468_s8 = scalar_lea.vmem %s25_s14, 128  ;;  %p473_p6 = scmp.lt.s32.totalorder %s25_s14, %s25_s14 }
  0x10   :  { %p469_p5 = scmp.ne.s32.totalorder %s25_s14, %s468_s8  ;;  %p474_p7 = scmp.lt.s32.totalorder %s468_s8, %s468_s8 }
  0x12   :  { %p475_p8 = por %p474_p7, %p473_p6 }
  0x14   :  { %p476_p9 = pnand %p475_p8, %p469_p5 }
  0x16   :  { %479 = shalt.err (!%p476_p9)
}
  0x17   :  { %27 = dma.hbm_to_vmem [thread:$0]  %s616_s0, 128, %s25_s14, [#allocation4]  }
  0x18   :  { %s506_s20 = smov [#allocation7]  }
  0x19   :  { %s49_s21 = sshll.u32 %s506_s20, 4  ;;  %s50_s21 = int_to_ptr.vmem [resolvable:$true] %s49_s21 }
  0x1a   :  { %s488_s22 = scalar_lea.vmem %s50_s21, 2048  ;;  %p493_p11 = scmp.lt.s32.totalorder %s50_s21, %s50_s21 }
  0x1b   :  { %p489_p10 = scmp.ne.s32.totalorder %s50_s21, %s488_s22  ;;  %p494_p12 = scmp.lt.s32.totalorder %s488_s22, %s488_s22 }
  0x1d   :  { %p495_p13 = por %p494_p12, %p493_p11 }
  0x1f   :  { %p496_p0 = pnand %p495_p13, %p489_p10 }
  0x21   :  { %499 = shalt.err (!%p496_p0)
}
  0x22   :  { %s507_s3 = smov 128   ;;  %s508_s23 = smov 8  }
  0x23   :  { %55 = dma.hbm_to_vmem [thread:$0]  %s621_s5, 2048, %s50_s21, [#allocation6], %s507_s3, %s507_s3, %s508_s23  }
  0x24   :  { %500 = dma.done.wait [#allocation4], 128  }
  0x25   :  { %501 = vsyncadd [#allocation4], 4294967168 }
  0x26   :  { %502 = dma.done.wait [#allocation6], 2112  }
  0x27   :  { %503 = vsyncadd [#allocation6], 4294965184  ;;  %v509_v1 = vmov 0.0   ;;  %vm510_vm0 = vmmov 0   ;;  %vm80_vm1 = vcmask 1043456   ;;  %vm76_vm2 = vcmask 31744  }
  0x28   :  { %386 = vmatprep.subr.mxu1 %v509_v1  ;;  %388 = vmatprep.mubr.msk.f32.mxu1 %vm510_vm0, %v509_v1  ;;  %v75_v2 = vld [vmem:[#allocation5] sm:$0xf]  ;;  %v74_v3 = vld [vmem:[%s617_s1] sm:$0xff]  ;;  %vm154_vm3 = vcmask 130048   ;;  %v250_v9 = vld [vmem:[#allocation7 + $0x68] sm:$0xff]  ;;  %vm349_vm4 = vcmask 7168  }
  0x29   :  { %398 = vmatprep.subr.mxu0 %v509_v1  ;;  %430 = vmatprep.mubr.msk.f32.mxu0 %vm510_vm0, %v509_v1  ;;  %v73_v4 = vld [vmem:[%s618_s2 + $0x8] sm:$0xff]  ;;  %v72_v6 = vld [vmem:[%s618_s2] sm:$0xff]  ;;  %v246_v13 = vld [vmem:[#allocation7 + $0x48] sm:$0xff] }
  0x2a   :  { %387 = vmatpush3.msk.msra.mxu1 %vm80_vm1, %v75_v2  ;;  %v252_v5 = vld [vmem:[#allocation7 + $0x78] sm:$0xff]  ;;  %v251_v8 = vld [vmem:[#allocation7 + $0x70] sm:$0xff]  ;;  %v249_v10 = vld [vmem:[#allocation7 + $0x60] sm:$0xff] }
  0x2b   :  { %389 = vmatmul.mubr.msk.f32.vlgmr.msra.gmra.mxu1 %vm76_vm2, %v74_v3  ;;  %391 = vmatprep.subr.mxu1 %v509_v1  ;;  %v71_v7 = vld [vmem:[#allocation3] sm:$0xff]  ;;  %v245_v14 = vld [vmem:[#allocation7 + $0x40] sm:$0xff]  ;;  %v242_v17 = vld [vmem:[#allocation7 + $0x28] sm:$0xff] }
  0x2c   :  { %392 = vmatpush3.msra.mxu1 %v73_v4  ;;  %395 = vmatprep.mubr.msk.f32.mxu1 %vm510_vm0, %v509_v1  ;;  %v248_v11 = vld [vmem:[#allocation7 + $0x58] sm:$0xff]  ;;  %v247_v12 = vld [vmem:[#allocation7 + $0x50] sm:$0xff]  ;;  %v241_v18 = vld [vmem:[#allocation7 + $0x20] sm:$0xff] }
  0x2d   :  { %393 = vmatprep.subr.mxu1 %v509_v1  ;;  %399 = vmatpush3.msra.mxu0 %v252_v5  ;;  %v244_v15 = vld [vmem:[#allocation7 + $0x38] sm:$0xff]  ;;  %v243_v16 = vld [vmem:[#allocation7 + $0x30] sm:$0xff]  ;;  %v238_v21 = vld [vmem:[#allocation7 + $0x8] sm:$0xff] }
  0x2e   :  { %394 = vmatpush3.msra.mxu1 %v72_v6  ;;  %400 = vmatprep.subr.mxu0 %v509_v1  ;;  %v240_v19 = vld [vmem:[#allocation7 + $0x18] sm:$0xff]  ;;  %v239_v20 = vld [vmem:[#allocation7 + $0x10] sm:$0xff]  ;;  %v237_v22 = vld [vmem:[#allocation7] sm:$0xff] }
  0x2f   :  { %396 = vmatmul.mubr.msk.f32.vlgmr.msra.gmra.mxu1 %vm154_vm3, %v71_v7  ;;  %401 = vmatpush3.msra.mxu0 %v251_v8  ;;  %v360_v26 = vld [vmem:[%s620_s4] ss:$0 sm:$0xff] }
  0x30   :  { %402 = vmatprep.subr.mxu0 %v509_v1  ;;  %v361_v31 = vld [vmem:[%s622_s6] ss:$0 sm:$0xff] }
  0x31   :  { %403 = vmatpush3.msra.mxu0 %v250_v9  ;;  %v362_v35 = vld [vmem:[%s623_s7] ss:$0 sm:$0xff] }
  0x32   :  { %404 = vmatprep.subr.mxu0 %v509_v1  ;;  %v363_v38 = vld [vmem:[#allocation2] ss:$0 sm:$0xff] }
  0x33   :  { %405 = vmatpush3.msra.mxu0 %v249_v10 }
  0x34   :  { %406 = vmatprep.subr.mxu0 %v509_v1 }
  0x35   :  { %407 = vmatpush3.msra.mxu0 %v248_v11 }
  0x36   :  { %408 = vmatprep.subr.mxu0 %v509_v1 }
  0x37   :  { %409 = vmatpush3.msra.mxu0 %v247_v12 }
  0x38   :  { %410 = vmatprep.subr.mxu0 %v509_v1 }
  0x39   :  { %411 = vmatpush3.msra.mxu0 %v246_v13 }
  0x3a   :  { %412 = vmatprep.subr.mxu0 %v509_v1 }
  0x3b   :  { %413 = vmatpush3.msra.mxu0 %v245_v14 }
  0x3c   :  { %414 = vmatprep.subr.mxu0 %v509_v1 }
  0x3d   :  { %415 = vmatpush3.msra.mxu0 %v244_v15 }
  0x3e   :  { %416 = vmatprep.subr.mxu0 %v509_v1 }
  0x3f   :  { %417 = vmatpush3.msra.mxu0 %v243_v16 }
  0x40   :  { %418 = vmatprep.subr.mxu0 %v509_v1 }
  0x41   :  { %419 = vmatpush3.msra.mxu0 %v242_v17 }
  0x42   :  { %420 = vmatprep.subr.mxu0 %v509_v1 }
  0x43   :  { %421 = vmatpush3.msra.mxu0 %v241_v18 }
  0x44   :  { %422 = vmatprep.subr.mxu0 %v509_v1 }
  0x45   :  { %423 = vmatpush3.msra.mxu0 %v240_v19 }
  0x46   :  { %424 = vmatprep.subr.mxu0 %v509_v1 }
  0x47   :  { %425 = vmatpush3.msra.mxu0 %v239_v20 }
  0x48   :  { %426 = vmatprep.subr.mxu0 %v509_v1 }
  0x49   :  { %427 = vmatpush3.msra.mxu0 %v238_v21 }
  0x4a   :  { %428 = vmatprep.subr.mxu0 %v509_v1 }
  0x4b   :  { %429 = vmatpush3.msra.mxu0 %v237_v22 }
  0xeb   :  { %v150_v23 = vpop.f32.mrf.mxu1 }
  0xed   :  { %v390_v24 = vpop.f32.mrf.mxu1 }
  0xef   :  { %v224_v25 = vpop.f32.mrf.mxu1 }
  0xf0   :  { %v225_v27 = vadd.f32 %v224_v25, %v150_v23 }
  0xf1   :  { %v397_v28 = vpop.f32.mrf.mxu1 }
  0xf2   :  { %v235_v29 = vadd.f32 %v360_v26, %v225_v27 }
  0xf4   :  { %v236_v30 = vmax.f32 %v235_v29, 0.0 }
  0xf6   :  { %431 = vmatmul.mubr.f32.vlgmr.msra.gmra.mxu0 %v236_v30 }
 0x1b6   :  { %v326_v32 = vpop.f32.mrf.mxu0 }
 0x1b7   :  { %v327_v33 = vadd.f32 %v361_v31, %v326_v32 }
 0x1b8   :  { %v432_v34 = vpop.f32.mrf.mxu0 }
 0x1b9   :  { %v330_v36 = vmax.f32 %v327_v33, 0.0 }
 0x1bb   :  { %v338_v37 = vmul.f32 %v362_v35, %v330_v36 }
 0x1bd   :  { %339 = vadd.xlane.f32.xlu0 %v338_v37 }
 0x246   :  { %v340_v39 = vpop.xlane.xlu0 %339 }
 0x247   :  { %v348_v40 = vadd.f32 %v363_v38, %v340_v39 }
 0x249   :  { %350 = vst.msk [vmem:[%s625_s9] sm:$0xff] %vm349_vm4, %v348_v40 }
 0x24a   :  { %355 = vsyncpa [#allocation4], 1 }
 0x24b   :  { %356 = vsyncpa [#allocation6], 1 }

</bundles_post_ra>
